<compile_context>
chip_gen: v7x
topology: tpu7x:2x2x1
jax: 0.10.0
libtpu: 0.0.40
codegen_flags: <defaults>
</compile_context>

<pallas_src>
import jax
import jax.numpy as jnp
from jax.experimental import pallas as pl
from jax.experimental.pallas import tpu as pltpu


def _identity_kernel(x_ref, o_ref):
    # Forward pass of LinearNet: return x unchanged (straight VMEM copy).
    o_ref[...] = x_ref[...]


def linearnet_forward(x, params=None):
    """LinearNet.forward: identity.  Fast path -- no Pallas launch at all."""
    del params  # built in __init__ but never used by forward(), as in the module
    return x


def linearnet_forward_pallas(x):
    """Minimal Pallas identity kernel (API-parity path).

    Single whole-array VMEM tile, no grid, output aliased to input.
    """
    B, F = x.shape
    # Lane-dense presentation: flatten to (1, B*F) when that is a multiple of
    # 128 so the store is an unmasked full-lane vst instead of vst.msk.
    lane_dense = (B * F) % 128 == 0
    xin = x.reshape(1, B * F) if lane_dense else x

    y = pl.pallas_call(
        _identity_kernel,
        out_shape=jax.ShapeDtypeStruct(xin.shape, xin.dtype),
        # Whole-array blocks, no grid: no pipeline/double-buffer machinery.
        in_specs=[pl.BlockSpec(memory_space=pltpu.MemorySpace.VMEM)],
        out_specs=pl.BlockSpec(memory_space=pltpu.MemorySpace.VMEM),
        # Output buffer aliases the input buffer -> no extra HBM allocation.
        input_output_aliases={0: 0},
    )(xin)

    return y.reshape(B, F) if lane_dense else y


def init_linearnet_params(key, input_size, num_layers, layers_size, output_size):
    """Build the nn.Linear parameter pytree exactly as the module's __init__
    does.  These parameters are NOT used by forward() (which is identity)."""
    # Mirror the module's construction; guard against mis-sized configs.
    assert num_layers >= 2 and len(layers_size) >= num_layers - 1, (
        "layers_size must provide at least num_layers - 1 widths")
    dims = [(input_size, layers_size[0])]
    dims += [(layers_size[i - 1], layers_size[i]) for i in range(1, num_layers - 1)]
    dims.append((layers_size[num_layers - 2], output_size))

    params = []
    for d_in, d_out in dims:
        key, wk, bk = jax.random.split(key, 3)
        bound = 1.0 / jnp.sqrt(d_in)
        w = jax.random.uniform(wk, (d_out, d_in), jnp.float32, -bound, bound)
        b = jax.random.uniform(bk, (d_out,), jnp.float32, -bound, bound)
        params.append({"weight": w, "bias": b})
    return params


if __name__ == "__main__":
    key = jax.random.PRNGKey(0)

    # Small shapes consistent with the module: batch=2, input_size=32.
    batch, input_size = 2, 32
    num_layers = 3
    layers_size = [16, 16]
    output_size = 10

    # Parameters exist (as in __init__) but forward() does not use them.
    params = init_linearnet_params(
        key, input_size, num_layers, layers_size, output_size
    )

    key, xk = jax.random.split(key)
    x = jax.random.normal(xk, (batch, input_size), dtype=jnp.float32)

    # Hot path: identity, no kernel launch.
    y_fast = linearnet_forward(x, params)

    # Pallas parity path: run the kernel once on TPU and verify.
    y_pallas = linearnet_forward_pallas(x)
    jax.block_until_ready(y_pallas)

    assert y_fast.shape == x.shape and y_fast.dtype == x.dtype
    assert y_pallas.shape == x.shape and y_pallas.dtype == x.dtype
    assert bool(jnp.array_equal(y_fast, x))
    assert bool(jnp.array_equal(y_pallas, x))

    print("KERNEL_OK")
</pallas_src>

<mosaic_0001>
module attributes {stable_mosaic.version = 11 : i64} {
  func.func @_identity_kernel(%arg0: memref<2x32xf32, #tpu.memory_space<vmem>>, %arg1: memref<2x32xf32, #tpu.memory_space<vmem>>) attributes {dimension_semantics = [], scalar_prefetch = 0 : i64, scratch_operands = 0 : i64, tpu.core_type = #tpu.core_type<tc>} {
    %c0 = arith.constant 0 : index
    %c0_0 = arith.constant 0 : index
    %0 = vector.load %arg0[%c0, %c0_0] : memref<2x32xf32, #tpu.memory_space<vmem>>, vector<2x32xf32>
    %c0_1 = arith.constant 0 : index
    %c0_2 = arith.constant 0 : index
    %1 = vector.load %arg1[%c0_1, %c0_2] : memref<2x32xf32, #tpu.memory_space<vmem>>, vector<2x32xf32>
    tpu.vector_store %arg1[%c0_1, %c0_2], %0 {strides = array<i32>} : memref<2x32xf32, #tpu.memory_space<vmem>>, vector<2x32xf32>,
    return
  }
}

</mosaic_0001>

<bundles_post_ra>
// kernel: tpu_custom_call.1
= control target key start
LH: loop header
LB: loop body
LE: loop exit
PB: predicated region body
PF: predicated region fallthrough
CT: control target
= control target key end

     0   :  { %6 = vsyncpa [#allocation3], 0  ;;  %s125_s0 = inlined_call_operand.hbm [shape: f32[2,32], index: 0, kind: input, shape index: {}, may-alias: {0,1}]   ;;  %s126_s1 = inlined_call_operand.hbm [shape: f32[2,32], index: 1, kind: output, shape index: {}, may-alias: {0,1}]  }
   0x1   :  { %7 = vsyncpa [#allocation4], 0  ;;  %s89_s6 = smov [#allocation2]   ;;  %s41_s10 = scalar_lea.hbm %s125_s0, 32 }
   0x2   :  { %s14_s7 = sshll.u32 %s89_s6, 4  ;;  %p42_p0 = scmp.ne.s32.totalorder %s125_s0, %s41_s10  ;;  %s15_s7 = int_to_ptr.vmem [resolvable:$true] %s14_s7 }
   0x3   :  { %p45_p1 = scmp.lt.u32.totalorder %s41_s10, %s125_s0 }
   0x5   :  { %p47_p2 = pnand %p45_p1, %p42_p0 }
   0x7   :  { %50 = shalt.err (!%p47_p2)
}
   0x8   :  { %s51_s15 = scalar_lea.vmem %s15_s7, 32  ;;  %p56_p4 = scmp.lt.s32.totalorder %s15_s7, %s15_s7 }
   0x9   :  { %p52_p3 = scmp.ne.s32.totalorder %s15_s7, %s51_s15  ;;  %p57_p5 = scmp.lt.s32.totalorder %s51_s15, %s51_s15 }
   0xb   :  { %p58_p6 = por %p57_p5, %p56_p4 }
   0xd   :  { %p59_p7 = pnand %p58_p6, %p52_p3 }
   0xf   :  { %62 = shalt.err (!%p59_p7)
}
  0x10   :  { %17 = dma.hbm_to_vmem [thread:$0]  %s125_s0, 32, %s15_s7, [#allocation3]  }
  0x11   :  { %85 = dma.done.wait [#allocation3], 32  }
  0x12   :  { %86 = vsyncadd [#allocation3], 4294967264  ;;  %s90_s18 = smov [#allocation5]   ;;  %vm22_vm0 = vcmask 254976   ;;  %v21_v0 = vld [vmem:[#allocation2] sm:$0x3] }
  0x13   :  { %s30_s19 = sshll.u32 %s90_s18, 4  ;;  %23 = vst.msk [vmem:[#allocation5] sm:$0x3] %vm22_vm0, %v21_v0  ;;  %s31_s19 = int_to_ptr.vmem [resolvable:$true] %s30_s19 }
  0x14   :  { %s63_s20 = scalar_lea.vmem %s31_s19, 32  ;;  %p68_p9 = scmp.lt.s32.totalorder %s31_s19, %s31_s19 }
  0x15   :  { %p64_p8 = scmp.ne.s32.totalorder %s31_s19, %s63_s20  ;;  %p69_p10 = scmp.lt.s32.totalorder %s63_s20, %s63_s20 }
  0x17   :  { %p70_p11 = por %p69_p10, %p68_p9 }
  0x19   :  { %p71_p12 = pnand %p70_p11, %p64_p8 }
  0x1b   :  { %74 = shalt.err (!%p71_p12)
}
  0x1c   :  { %s75_s23 = scalar_lea.hbm %s126_s1, 32 }
  0x1d   :  { %p76_p13 = scmp.ne.s32.totalorder %s126_s1, %s75_s23  ;;  %p79_p0 = scmp.lt.u32.totalorder %s75_s23, %s126_s1 }
  0x1f   :  { %p81_p1 = pnand %p79_p0, %p76_p13 }
  0x21   :  { %84 = shalt.err (!%p81_p1)
}
  0x22   :  { %33 = dma.vmem_to_hbm [thread:$0]  %s31_s19, 32, %s126_s1, [#allocation4]  }
  0x23   :  { %87 = dma.done.wait [#allocation4], 32  }
  0x24   :  { %88 = vsyncadd [#allocation4], 4294967264 }
  0x25   :  { %37 = vsyncpa [#allocation3], 1 }
  0x26   :  { %38 = vsyncpa [#allocation4], 1 }

</bundles_post_ra>
